<compile_context>
chip_gen: v6e
topology: v6e:2x2x1
jax: 0.10.0
libtpu: 0.0.40
codegen_flags: <defaults>
</compile_context>

<pallas_src>
import jax
import jax.numpy as jnp
from jax.experimental import pallas as pl
from jax.experimental.pallas import tpu as pltpu

BN_EPS = 1e-5


def _round_up(a, m):
    return ((a + m - 1) // m) * m


def _pick_batch_block(n, howo, lane_budget=2048):
    """How many images to fold into the lane dim per grid step.

    Prefers >=2 grid steps (v7x has 2 TensorCores sharing the "parallel"
    axis) and bounds the per-step lane width / VMEM footprint.
    """
    b = max(1, min(n // 2 if n >= 2 else 1, max(1, lane_budget // howo)))
    while n % b:
        b -= 1
    return max(b, 1)


# ----------------------------- wrapper + kernel ---------------------------- #

def decode_block_forward(x_nchw, y_nchw, params):
    (Wd, bd, g1, b1, m1, v1, Wc, bc, g2, b2, m2, v2) = params
    N, Cin, H, W = x_nchw.shape
    Cu = Wd.shape[1]                  # conv_ch (deconv output channels)
    Cy = y_nchw.shape[1]              # skip-connection channels
    Co = Wc.shape[0]                  # conv output channels
    Ci2 = Cu + Cy                     # channels seen by the 3x3 conv
    Ho, Wo = 2 * H, 2 * W
    HoWo = Ho * Wo

    # ---- batch-folding geometry: lanes ordered (row, image, col) ----
    B = _pick_batch_block(N, HoWo)
    G = N // B                                     # grid steps
    ROWSTRIDE = B * Wo                             # lanes per high-res row
    LANES = Ho * ROWSTRIDE                         # = B * HoWo
    OFF = _round_up(ROWSTRIDE + 1, 128)            # lane-aligned zero strip
    LBUF = 2 * OFF + LANES                         # padded flat buffer length

    # ---- fold BN1 (+ deconv bias) into weights / shift ----
    scale1 = g1 / jnp.sqrt(v1 + BN_EPS)                        # (Cu,)
    shift1 = b1 + (bd - m1) * scale1                           # (Cu,)
    # (Cin, Cu, 2, 2) -> (kh, kw, cu, cin) -> (4*Cu, Cin); rows = (tap, cu)
    wd = jnp.transpose(Wd, (2, 3, 1, 0)).reshape(4 * Cu, Cin)
    wd = wd * jnp.tile(scale1, 4)[:, None]
    sh1 = jnp.tile(shift1, 4)[:, None]                         # (4*Cu, 1)

    # ---- fold BN2 (+ conv bias) into weights / shift ----
    scale2 = g2 / jnp.sqrt(v2 + BN_EPS)                        # (Co,)
    shift2 = b2 + (bc - m2) * scale2                           # (Co,)
    # (Co, Ci2, 3, 3) -> (dr, dc, co, ci) -> (9, Co, Ci2)
    wc = jnp.transpose(Wc, (2, 3, 0, 1)).reshape(9, Co, Ci2)
    wc = wc * scale2[None, :, None]
    sh2 = shift2[:, None]                                      # (Co, 1)

    # ---- per-lane tap-select masks (replace the dense scatter matmuls) ----
    rpar = (jnp.arange(Ho) % 2)[:, None, None]                 # (Ho,1,1)
    cpar = (jnp.arange(Wo) % 2)[None, None, :]                 # (1,1,Wo)
    taps = []
    for kh in range(2):
        for kw in range(2):
            m = (rpar == kh) & (cpar == kw)                    # (Ho,1,Wo)
            taps.append(jnp.broadcast_to(m, (Ho, B, Wo)).reshape(LANES))
    tapmask = jnp.stack(taps, axis=0).astype(jnp.float32)      # (4, LANES)

    # ---- column-border masks (kill wrap-around of the flat (r,b,c) layout) --
    cidx = jnp.broadcast_to(jnp.arange(Wo)[None, None, :], (Ho, B, Wo))
    cidx = cidx.reshape(LANES)
    colmask = jnp.stack([(cidx != 0), (cidx != Wo - 1)],
                        axis=0).astype(jnp.float32)            # (2, LANES)

    # ---- wrapper-side layout plumbing (cheap XLA ops, no compute) ----
    # nearest-neighbour 2x upsample of x; the kernel computes all 4 deconv
    # taps on it and selects the right one per lane.
    xup = jnp.broadcast_to(x_nchw[:, :, :, None, :, None],
                           (N, Cin, H, 2, W, 2)).reshape(N, Cin, Ho, Wo)
    xup = xup.reshape(G, B, Cin, Ho, Wo).transpose(0, 2, 3, 1, 4)
    xup = xup.reshape(G, Cin, LANES)                           # lanes=(r,b,c)
    ysk = y_nchw.reshape(G, B, Cy, Ho, Wo).transpose(0, 2, 3, 1, 4)
    ysk = ysk.reshape(G, Cy, LANES)

    def kernel(xup_ref, y_ref, wd_ref, sh1_ref, tm_ref, wc_ref, sh2_ref,
               cm_ref, o_ref, buf_ref):
        # --- stage 1: all 4 transpose-conv taps + folded BN1 + SiLU ---------
        # (4*Cu, Cin) x (Cin, LANES) -> (4*Cu, LANES), rows = (tap, cu)
        t = jnp.dot(wd_ref[...], xup_ref[0],
                    preferred_element_type=jnp.float32) + sh1_ref[...]
        t = t * jax.nn.sigmoid(t)                              # SiLU

        # --- stage 2: per-lane tap select (k=2,s=2 deconv: exactly one tap
        #     contributes to each output pixel) ------------------------------
        up = t[0:Cu, :] * tm_ref[0:1, :]
        for tap in range(1, 4):
            up = up + t[tap * Cu:(tap + 1) * Cu, :] * tm_ref[tap:tap + 1, :]

        # --- stage 3: padded, channel-concatenated image slab in VMEM -------
        # Only the two lane-aligned zero strips are rewritten each step; the
        # data region is fully overwritten with ONE aligned 8-sublane store.
        buf_ref[:, 0:OFF] = jnp.zeros((Ci2, OFF), jnp.float32)
        buf_ref[:, OFF + LANES:OFF + LANES + OFF] = jnp.zeros(
            (Ci2, OFF), jnp.float32)
        buf_ref[:, OFF:OFF + LANES] = jnp.concatenate([up, y_ref[0]], axis=0)

        # --- stage 4: 3x3 conv as 9 accumulating dots over shifted windows --
        acc = None
        for dr in range(3):
            for dc in range(3):
                s = OFF + (dr - 1) * ROWSTRIDE + (dc - 1)      # static offset
                win = buf_ref[:, s:s + LANES]                  # (Ci2, LANES)
                if dc == 0:
                    win = win * cm_ref[0:1, :]                 # left border
                elif dc == 2:
                    win = win * cm_ref[1:2, :]                 # right border
                p = jnp.dot(wc_ref[dr * 3 + dc], win,
                            preferred_element_type=jnp.float32)
                acc = p if acc is None else acc + p

        # --- stage 5: folded BN2 + SiLU, lane-dense store -------------------
        acc = acc + sh2_ref[...]
        acc = acc * jax.nn.sigmoid(acc)                        # SiLU
        o_ref[0] = acc

    out_flat = pl.pallas_call(
        kernel,
        out_shape=jax.ShapeDtypeStruct((G, Co, LANES), jnp.float32),
        grid_spec=pltpu.PrefetchScalarGridSpec(
            num_scalar_prefetch=0,
            grid=(G,),
            in_specs=[
                pl.BlockSpec((1, Cin, LANES), lambda n: (n, 0, 0)),
                pl.BlockSpec((1, Cy, LANES), lambda n: (n, 0, 0)),
                pl.BlockSpec((4 * Cu, Cin), lambda n: (0, 0)),
                pl.BlockSpec((4 * Cu, 1), lambda n: (0, 0)),
                pl.BlockSpec((4, LANES), lambda n: (0, 0)),
                pl.BlockSpec((9, Co, Ci2), lambda n: (0, 0, 0)),
                pl.BlockSpec((Co, 1), lambda n: (0, 0)),
                pl.BlockSpec((2, LANES), lambda n: (0, 0)),
            ],
            out_specs=pl.BlockSpec((1, Co, LANES), lambda n: (n, 0, 0)),
            scratch_shapes=[pltpu.VMEM((Ci2, LBUF), jnp.float32)],
        ),
        compiler_params=pltpu.CompilerParams(
            dimension_semantics=("parallel",),
            vmem_limit_bytes=32 * 1024 * 1024),
    )(xup, ysk, wd, sh1, tapmask, wc, sh2, colmask)

    # undo the (row, image, col) lane layout -> NCHW (wrapper layout plumbing)
    out = out_flat.reshape(G, Co, Ho, B, Wo).transpose(0, 3, 1, 2, 4)
    return out.reshape(N, Co, Ho, Wo)


# ----------------------------- reference ----------------------------------- #

def ref_forward(x, y, params):
    (Wd, bd, g1, b1, m1, v1, Wc, bc, g2, b2, m2, v2) = params
    N, C, H, W = x.shape
    O = Wd.shape[1]
    # ConvTranspose2d k=2 s=2
    r = jnp.einsum('nchw,coab->nhawbo', x, Wd)                 # (N,H,2,W,2,O)
    up = r.reshape(N, 2 * H, 2 * W, O) + bd
    up = (up - m1) / jnp.sqrt(v1 + BN_EPS) * g1 + b1
    up = up * jax.nn.sigmoid(up)
    up = jnp.transpose(up, (0, 3, 1, 2))                       # NCHW
    cat = jnp.concatenate([up, y], axis=1)
    out = jax.lax.conv_general_dilated(
        cat, Wc, window_strides=(1, 1), padding=((1, 1), (1, 1)),
        dimension_numbers=('NCHW', 'OIHW', 'NCHW'))
    out = out + bc[None, :, None, None]
    out = ((out - m2[None, :, None, None])
           / jnp.sqrt(v2 + BN_EPS)[None, :, None, None]
           * g2[None, :, None, None] + b2[None, :, None, None])
    out = out * jax.nn.sigmoid(out)
    return out


# ------------------------------- main --------------------------------------- #

if __name__ == "__main__":
    # config = [stride, deconv, deconv_ch, conv_ch]
    stride, deconv, deconv_ch, conv_ch = 4, True, 8, 4
    in_ch = conv_ch * 2
    N, H, W = 2, 8, 8

    key = jax.random.PRNGKey(0)
    ks = jax.random.split(key, 16)

    # deterministic synthetic parameters
    Wd = 0.2 * jax.random.normal(ks[0], (deconv_ch, conv_ch, 2, 2), jnp.float32)
    bd = 0.1 * jax.random.normal(ks[1], (conv_ch,), jnp.float32)
    g1 = 1.0 + 0.1 * jax.random.normal(ks[2], (conv_ch,), jnp.float32)
    b1 = 0.1 * jax.random.normal(ks[3], (conv_ch,), jnp.float32)
    m1 = 0.1 * jax.random.normal(ks[4], (conv_ch,), jnp.float32)
    v1 = jax.random.uniform(ks[5], (conv_ch,), jnp.float32, 0.5, 1.5)
    Wc = 0.1 * jax.random.normal(ks[6], (conv_ch, in_ch, 3, 3), jnp.float32)
    bc = 0.1 * jax.random.normal(ks[7], (conv_ch,), jnp.float32)
    g2 = 1.0 + 0.1 * jax.random.normal(ks[8], (conv_ch,), jnp.float32)
    b2 = 0.1 * jax.random.normal(ks[9], (conv_ch,), jnp.float32)
    m2 = 0.1 * jax.random.normal(ks[10], (conv_ch,), jnp.float32)
    v2 = jax.random.uniform(ks[11], (conv_ch,), jnp.float32, 0.5, 1.5)
    params = (Wd, bd, g1, b1, m1, v1, Wc, bc, g2, b2, m2, v2)

    # inputs (NCHW, like the PyTorch module)
    x = jax.random.normal(ks[12], (N, deconv_ch, H, W), jnp.float32)
    y = jax.random.normal(ks[13], (N, conv_ch, 2 * H, 2 * W), jnp.float32)

    out = jax.jit(decode_block_forward)(x, y, params)
    out = jax.block_until_ready(out)

    ref = jax.block_until_ready(ref_forward(x, y, params))
    assert out.shape == (N, conv_ch, 2 * H, 2 * W), out.shape
    err = float(jnp.max(jnp.abs(out - ref)))
    assert jnp.allclose(out, ref, atol=1e-3, rtol=1e-3), err

    print("KERNEL_OK")
</pallas_src>

<mosaic_0001>
module attributes {stable_mosaic.version = 11 : i64} {
  func.func @kernel(%arg0: i32, %arg1: memref<1x8x256xf32, #tpu.memory_space<vmem>>, %arg2: memref<1x4x256xf32, #tpu.memory_space<vmem>>, %arg3: memref<16x8xf32, #tpu.memory_space<vmem>>, %arg4: memref<16x1xf32, #tpu.memory_space<vmem>>, %arg5: memref<4x256xf32, #tpu.memory_space<vmem>>, %arg6: memref<9x4x8xf32, #tpu.memory_space<vmem>>, %arg7: memref<4x1xf32, #tpu.memory_space<vmem>>, %arg8: memref<2x256xf32, #tpu.memory_space<vmem>>, %arg9: memref<1x4x256xf32, #tpu.memory_space<vmem>>, %arg10: memref<8x512xf32, #tpu.memory_space<vmem>>) attributes {dimension_semantics = [#tpu.dimension_semantics<parallel>], iteration_bounds = array<i64: 2>, scalar_prefetch = 0 : i64, scratch_operands = 1 : i64, tpu.core_type = #tpu.core_type<tc>, window_params = [{transform_indices = @transform_0, window_bounds = array<i64: 1, 8, 256>}, {transform_indices = @transform_1, window_bounds = array<i64: 1, 4, 256>}, {pipeline_mode = #tpu.pipeline_mode<synchronous>, transform_indices = @transform_2, window_bounds = array<i64: 16, 8>}, {pipeline_mode = #tpu.pipeline_mode<synchronous>, transform_indices = @transform_3, window_bounds = array<i64: 16, 1>}, {pipeline_mode = #tpu.pipeline_mode<synchronous>, transform_indices = @transform_4, window_bounds = array<i64: 4, 256>}, {pipeline_mode = #tpu.pipeline_mode<synchronous>, transform_indices = @transform_5, window_bounds = array<i64: 9, 4, 8>}, {pipeline_mode = #tpu.pipeline_mode<synchronous>, transform_indices = @transform_6, window_bounds = array<i64: 4, 1>}, {pipeline_mode = #tpu.pipeline_mode<synchronous>, transform_indices = @transform_7, window_bounds = array<i64: 2, 256>}, {transform_indices = @transform_8, window_bounds = array<i64: 1, 4, 256>}]} {
    %c0 = arith.constant 0 : index
    %c0_0 = arith.constant 0 : index
    %0 = vector.load %arg3[%c0, %c0_0] : memref<16x8xf32, #tpu.memory_space<vmem>>, vector<16x8xf32>
    %c0_1 = arith.constant 0 : index
    %c0_2 = arith.constant 0 : index
    %c0_3 = arith.constant 0 : index
    %1 = vector.load %arg1[%c0_1, %c0_2, %c0_3] : memref<1x8x256xf32, #tpu.memory_space<vmem>>, vector<1x8x256xf32>
    %2 = vector.shape_cast %1 : vector<1x8x256xf32> to vector<8x256xf32>
    %cst = arith.constant dense<0.000000e+00> : vector<16x256xf32>
    %3 = tpu.matmul %0, %2, %cst {dimension_numbers = #tpu.dot_dimension_numbers<[1], [0], [0], [1], [0, 0, 1, 1], [], []>} : vector<16x8xf32>, vector<8x256xf32>, vector<16x256xf32> -> vector<16x256xf32>
    %c0_4 = arith.constant 0 : index
    %c0_5 = arith.constant 0 : index
    %4 = vector.load %arg4[%c0_4, %c0_5] : memref<16x1xf32, #tpu.memory_space<vmem>>, vector<16x1xf32>
    %5 = vector.broadcast %4 : vector<16x1xf32> to vector<16x256xf32>
    %6 = arith.addf %3, %5 : vector<16x256xf32>
    %7 = arith.negf %6 : vector<16x256xf32>
    %8 = math.exp %7 : vector<16x256xf32>
    %cst_6 = arith.constant 1.000000e+00 : f32
    %9 = vector.broadcast %cst_6 : f32 to vector<16x256xf32>
    %10 = arith.addf %9, %8 : vector<16x256xf32>
    %11 = arith.divf %9, %10 : vector<16x256xf32>
    %12 = arith.mulf %6, %11 : vector<16x256xf32>
    %13 = vector.extract_strided_slice %12 {offsets = [0, 0], sizes = [4, 256], strides = [1, 1]} : vector<16x256xf32> to vector<4x256xf32>
    %c0_7 = arith.constant 0 : index
    %c0_8 = arith.constant 0 : index
    %14 = vector.load %arg5[%c0_7, %c0_8] : memref<4x256xf32, #tpu.memory_space<vmem>>, vector<1x256xf32>
    %15 = vector.broadcast %14 : vector<1x256xf32> to vector<4x256xf32>
    %16 = arith.mulf %13, %15 : vector<4x256xf32>
    %17 = vector.extract_strided_slice %12 {offsets = [4, 0], sizes = [4, 256], strides = [1, 1]} : vector<16x256xf32> to vector<4x256xf32>
    %c1 = arith.constant 1 : index
    %c0_9 = arith.constant 0 : index
    %18 = vector.load %arg5[%c1, %c0_9] : memref<4x256xf32, #tpu.memory_space<vmem>>, vector<1x256xf32>
    %19 = vector.broadcast %18 : vector<1x256xf32> to vector<4x256xf32>
    %20 = arith.mulf %17, %19 : vector<4x256xf32>
    %21 = arith.addf %16, %20 : vector<4x256xf32>
    %22 = vector.extract_strided_slice %12 {offsets = [8, 0], sizes = [4, 256], strides = [1, 1]} : vector<16x256xf32> to vector<4x256xf32>
    %c2 = arith.constant 2 : index
    %c0_10 = arith.constant 0 : index
    %23 = vector.load %arg5[%c2, %c0_10] : memref<4x256xf32, #tpu.memory_space<vmem>>, vector<1x256xf32>
    %24 = vector.broadcast %23 : vector<1x256xf32> to vector<4x256xf32>
    %25 = arith.mulf %22, %24 : vector<4x256xf32>
    %26 = arith.addf %21, %25 : vector<4x256xf32>
    %27 = vector.extract_strided_slice %12 {offsets = [12, 0], sizes = [4, 256], strides = [1, 1]} : vector<16x256xf32> to vector<4x256xf32>
    %c3 = arith.constant 3 : index
    %c0_11 = arith.constant 0 : index
    %28 = vector.load %arg5[%c3, %c0_11] : memref<4x256xf32, #tpu.memory_space<vmem>>, vector<1x256xf32>
    %29 = vector.broadcast %28 : vector<1x256xf32> to vector<4x256xf32>
    %30 = arith.mulf %27, %29 : vector<4x256xf32>
    %31 = arith.addf %26, %30 : vector<4x256xf32>
    %cst_12 = arith.constant 0.000000e+00 : f32
    %32 = vector.broadcast %cst_12 : f32 to vector<8x128xf32>
    %c0_13 = arith.constant 0 : index
    %c0_14 = arith.constant 0 : index
    %33 = vector.load %arg10[%c0_13, %c0_14] : memref<8x512xf32, #tpu.memory_space<vmem>>, vector<8x128xf32>
    tpu.vector_store %arg10[%c0_13, %c0_14], %32 {strides = array<i32>} : memref<8x512xf32, #tpu.memory_space<vmem>>, vector<8x128xf32>,
    %cst_15 = arith.constant 0.000000e+00 : f32
    %34 = vector.broadcast %cst_15 : f32 to vector<8x128xf32>
    %c0_16 = arith.constant 0 : index
    %c384 = arith.constant 384 : index
    %35 = vector.load %arg10[%c0_16, %c384] : memref<8x512xf32, #tpu.memory_space<vmem>>, vector<8x128xf32>
    tpu.vector_store %arg10[%c0_16, %c384], %34 {strides = array<i32>} : memref<8x512xf32, #tpu.memory_space<vmem>>, vector<8x128xf32>,
    %c0_17 = arith.constant 0 : index
    %c0_18 = arith.constant 0 : index
    %c0_19 = arith.constant 0 : index
    %36 = vector.load %arg2[%c0_17, %c0_18, %c0_19] : memref<1x4x256xf32, #tpu.memory_space<vmem>>, vector<1x4x256xf32>
    %37 = vector.shape_cast %36 : vector<1x4x256xf32> to vector<4x256xf32>
    %38 = tpu.concatenate %31, %37 in 0 : vector<4x256xf32>, vector<4x256xf32> -> vector<8x256xf32>
    %c0_20 = arith.constant 0 : index
    %c128 = arith.constant 128 : index
    %39 = vector.load %arg10[%c0_20, %c128] : memref<8x512xf32, #tpu.memory_space<vmem>>, vector<8x256xf32>
    tpu.vector_store %arg10[%c0_20, %c128], %38 {strides = array<i32>} : memref<8x512xf32, #tpu.memory_space<vmem>>, vector<8x256xf32>,
    %c0_21 = arith.constant 0 : index
    %c111 = arith.constant 111 : index
    %40 = vector.load %arg10[%c0_21, %c111] : memref<8x512xf32, #tpu.memory_space<vmem>>, vector<8x256xf32>
    %c0_22 = arith.constant 0 : index
    %c0_23 = arith.constant 0 : index
    %41 = vector.load %arg8[%c0_22, %c0_23] : memref<2x256xf32, #tpu.memory_space<vmem>>, vector<1x256xf32>
    %42 = vector.broadcast %41 : vector<1x256xf32> to vector<8x256xf32>
    %43 = arith.mulf %40, %42 : vector<8x256xf32>
    %c0_24 = arith.constant 0 : index
    %c0_25 = arith.constant 0 : index
    %c0_26 = arith.constant 0 : index
    %44 = vector.load %arg6[%c0_24, %c0_25, %c0_26] : memref<9x4x8xf32, #tpu.memory_space<vmem>>, vector<1x4x8xf32>
    %45 = vector.shape_cast %44 : vector<1x4x8xf32> to vector<4x8xf32>
    %cst_27 = arith.constant dense<0.000000e+00> : vector<4x256xf32>
    %46 = tpu.matmul %45, %43, %cst_27 {dimension_numbers = #tpu.dot_dimension_numbers<[1], [0], [0], [1], [0, 0, 1, 1], [], []>} : vector<4x8xf32>, vector<8x256xf32>, vector<4x256xf32> -> vector<4x256xf32>
    %c0_28 = arith.constant 0 : index
    %c112 = arith.constant 112 : index
    %47 = vector.load %arg10[%c0_28, %c112] : memref<8x512xf32, #tpu.memory_space<vmem>>, vector<8x256xf32>
    %c1_29 = arith.constant 1 : index
    %c0_30 = arith.constant 0 : index
    %c0_31 = arith.constant 0 : index
    %48 = vector.load %arg6[%c1_29, %c0_30, %c0_31] : memref<9x4x8xf32, #tpu.memory_space<vmem>>, vector<1x4x8xf32>
    %49 = vector.shape_cast %48 : vector<1x4x8xf32> to vector<4x8xf32>
    %cst_32 = arith.constant dense<0.000000e+00> : vector<4x256xf32>
    %50 = tpu.matmul %49, %47, %cst_32 {dimension_numbers = #tpu.dot_dimension_numbers<[1], [0], [0], [1], [0, 0, 1, 1], [], []>} : vector<4x8xf32>, vector<8x256xf32>, vector<4x256xf32> -> vector<4x256xf32>
    %51 = arith.addf %46, %50 : vector<4x256xf32>
    %c0_33 = arith.constant 0 : index
    %c113 = arith.constant 113 : index
    %52 = vector.load %arg10[%c0_33, %c113] : memref<8x512xf32, #tpu.memory_space<vmem>>, vector<8x256xf32>
    %c1_34 = arith.constant 1 : index
    %c0_35 = arith.constant 0 : index
    %53 = vector.load %arg8[%c1_34, %c0_35] : memref<2x256xf32, #tpu.memory_space<vmem>>, vector<1x256xf32>
    %54 = vector.broadcast %53 : vector<1x256xf32> to vector<8x256xf32>
    %55 = arith.mulf %52, %54 : vector<8x256xf32>
    %c2_36 = arith.constant 2 : index
    %c0_37 = arith.constant 0 : index
    %c0_38 = arith.constant 0 : index
    %56 = vector.load %arg6[%c2_36, %c0_37, %c0_38] : memref<9x4x8xf32, #tpu.memory_space<vmem>>, vector<1x4x8xf32>
    %57 = vector.shape_cast %56 : vector<1x4x8xf32> to vector<4x8xf32>
    %cst_39 = arith.constant dense<0.000000e+00> : vector<4x256xf32>
    %58 = tpu.matmul %57, %55, %cst_39 {dimension_numbers = #tpu.dot_dimension_numbers<[1], [0], [0], [1], [0, 0, 1, 1], [], []>} : vector<4x8xf32>, vector<8x256xf32>, vector<4x256xf32> -> vector<4x256xf32>
    %59 = arith.addf %51, %58 : vector<4x256xf32>
    %c0_40 = arith.constant 0 : index
    %c127 = arith.constant 127 : index
    %60 = vector.load %arg10[%c0_40, %c127] : memref<8x512xf32, #tpu.memory_space<vmem>>, vector<8x256xf32>
    %c0_41 = arith.constant 0 : index
    %c0_42 = arith.constant 0 : index
    %61 = vector.load %arg8[%c0_41, %c0_42] : memref<2x256xf32, #tpu.memory_space<vmem>>, vector<1x256xf32>
    %62 = vector.broadcast %61 : vector<1x256xf32> to vector<8x256xf32>
    %63 = arith.mulf %60, %62 : vector<8x256xf32>
    %c3_43 = arith.constant 3 : index
    %c0_44 = arith.constant 0 : index
    %c0_45 = arith.constant 0 : index
    %64 = vector.load %arg6[%c3_43, %c0_44, %c0_45] : memref<9x4x8xf32, #tpu.memory_space<vmem>>, vector<1x4x8xf32>
    %65 = vector.shape_cast %64 : vector<1x4x8xf32> to vector<4x8xf32>
    %cst_46 = arith.constant dense<0.000000e+00> : vector<4x256xf32>
    %66 = tpu.matmul %65, %63, %cst_46 {dimension_numbers = #tpu.dot_dimension_numbers<[1], [0], [0], [1], [0, 0, 1, 1], [], []>} : vector<4x8xf32>, vector<8x256xf32>, vector<4x256xf32> -> vector<4x256xf32>
    %67 = arith.addf %59, %66 : vector<4x256xf32>
    %c0_47 = arith.constant 0 : index
    %c128_48 = arith.constant 128 : index
    %68 = vector.load %arg10[%c0_47, %c128_48] : memref<8x512xf32, #tpu.memory_space<vmem>>, vector<8x256xf32>
    %c4 = arith.constant 4 : index
    %c0_49 = arith.constant 0 : index
    %c0_50 = arith.constant 0 : index
    %69 = vector.load %arg6[%c4, %c0_49, %c0_50] : memref<9x4x8xf32, #tpu.memory_space<vmem>>, vector<1x4x8xf32>
    %70 = vector.shape_cast %69 : vector<1x4x8xf32> to vector<4x8xf32>
    %cst_51 = arith.constant dense<0.000000e+00> : vector<4x256xf32>
    %71 = tpu.matmul %70, %68, %cst_51 {dimension_numbers = #tpu.dot_dimension_numbers<[1], [0], [0], [1], [0, 0, 1, 1], [], []>} : vector<4x8xf32>, vector<8x256xf32>, vector<4x256xf32> -> vector<4x256xf32>
    %72 = arith.addf %67, %71 : vector<4x256xf32>
    %c0_52 = arith.constant 0 : index
    %c129 = arith.constant 129 : index
    %73 = vector.load %arg10[%c0_52, %c129] : memref<8x512xf32, #tpu.memory_space<vmem>>, vector<8x256xf32>
    %c1_53 = arith.constant 1 : index
    %c0_54 = arith.constant 0 : index
    %74 = vector.load %arg8[%c1_53, %c0_54] : memref<2x256xf32, #tpu.memory_space<vmem>>, vector<1x256xf32>
    %75 = vector.broadcast %74 : vector<1x256xf32> to vector<8x256xf32>
    %76 = arith.mulf %73, %75 : vector<8x256xf32>
    %c5 = arith.constant 5 : index
    %c0_55 = arith.constant 0 : index
    %c0_56 = arith.constant 0 : index
    %77 = vector.load %arg6[%c5, %c0_55, %c0_56] : memref<9x4x8xf32, #tpu.memory_space<vmem>>, vector<1x4x8xf32>
    %78 = vector.shape_cast %77 : vector<1x4x8xf32> to vector<4x8xf32>
    %cst_57 = arith.constant dense<0.000000e+00> : vector<4x256xf32>
    %79 = tpu.matmul %78, %76, %cst_57 {dimension_numbers = #tpu.dot_dimension_numbers<[1], [0], [0], [1], [0, 0, 1, 1], [], []>} : vector<4x8xf32>, vector<8x256xf32>, vector<4x256xf32> -> vector<4x256xf32>
    %80 = arith.addf %72, %79 : vector<4x256xf32>
    %c0_58 = arith.constant 0 : index
    %c143 = arith.constant 143 : index
    %81 = vector.load %arg10[%c0_58, %c143] : memref<8x512xf32, #tpu.memory_space<vmem>>, vector<8x256xf32>
    %c0_59 = arith.constant 0 : index
    %c0_60 = arith.constant 0 : index
    %82 = vector.load %arg8[%c0_59, %c0_60] : memref<2x256xf32, #tpu.memory_space<vmem>>, vector<1x256xf32>
    %83 = vector.broadcast %82 : vector<1x256xf32> to vector<8x256xf32>
    %84 = arith.mulf %81, %83 : vector<8x256xf32>
    %c6 = arith.constant 6 : index
    %c0_61 = arith.constant 0 : index
    %c0_62 = arith.constant 0 : index
    %85 = vector.load %arg6[%c6, %c0_61, %c0_62] : memref<9x4x8xf32, #tpu.memory_space<vmem>>, vector<1x4x8xf32>
    %86 = vector.shape_cast %85 : vector<1x4x8xf32> to vector<4x8xf32>
    %cst_63 = arith.constant dense<0.000000e+00> : vector<4x256xf32>
    %87 = tpu.matmul %86, %84, %cst_63 {dimension_numbers = #tpu.dot_dimension_numbers<[1], [0], [0], [1], [0, 0, 1, 1], [], []>} : vector<4x8xf32>, vector<8x256xf32>, vector<4x256xf32> -> vector<4x256xf32>
    %88 = arith.addf %80, %87 : vector<4x256xf32>
    %c0_64 = arith.constant 0 : index
    %c144 = arith.constant 144 : index
    %89 = vector.load %arg10[%c0_64, %c144] : memref<8x512xf32, #tpu.memory_space<vmem>>, vector<8x256xf32>
    %c7 = arith.constant 7 : index
    %c0_65 = arith.constant 0 : index
    %c0_66 = arith.constant 0 : index
    %90 = vector.load %arg6[%c7, %c0_65, %c0_66] : memref<9x4x8xf32, #tpu.memory_space<vmem>>, vector<1x4x8xf32>
    %91 = vector.shape_cast %90 : vector<1x4x8xf32> to vector<4x8xf32>
    %cst_67 = arith.constant dense<0.000000e+00> : vector<4x256xf32>
    %92 = tpu.matmul %91, %89, %cst_67 {dimension_numbers = #tpu.dot_dimension_numbers<[1], [0], [0], [1], [0, 0, 1, 1], [], []>} : vector<4x8xf32>, vector<8x256xf32>, vector<4x256xf32> -> vector<4x256xf32>
    %93 = arith.addf %88, %92 : vector<4x256xf32>
    %c0_68 = arith.constant 0 : index
    %c145 = arith.constant 145 : index
    %94 = vector.load %arg10[%c0_68, %c145] : memref<8x512xf32, #tpu.memory_space<vmem>>, vector<8x256xf32>
    %c1_69 = arith.constant 1 : index
    %c0_70 = arith.constant 0 : index
    %95 = vector.load %arg8[%c1_69, %c0_70] : memref<2x256xf32, #tpu.memory_space<vmem>>, vector<1x256xf32>
    %96 = vector.broadcast %95 : vector<1x256xf32> to vector<8x256xf32>
    %97 = arith.mulf %94, %96 : vector<8x256xf32>
    %c8 = arith.constant 8 : index
    %c0_71 = arith.constant 0 : index
    %c0_72 = arith.constant 0 : index
    %98 = vector.load %arg6[%c8, %c0_71, %c0_72] : memref<9x4x8xf32, #tpu.memory_space<vmem>>, vector<1x4x8xf32>
    %99 = vector.shape_cast %98 : vector<1x4x8xf32> to vector<4x8xf32>
    %cst_73 = arith.constant dense<0.000000e+00> : vector<4x256xf32>
    %100 = tpu.matmul %99, %97, %cst_73 {dimension_numbers = #tpu.dot_dimension_numbers<[1], [0], [0], [1], [0, 0, 1, 1], [], []>} : vector<4x8xf32>, vector<8x256xf32>, vector<4x256xf32> -> vector<4x256xf32>
    %101 = arith.addf %93, %100 : vector<4x256xf32>
    %c0_74 = arith.constant 0 : index
    %c0_75 = arith.constant 0 : index
    %102 = vector.load %arg7[%c0_74, %c0_75] : memref<4x1xf32, #tpu.memory_space<vmem>>, vector<4x1xf32>
    %103 = vector.broadcast %102 : vector<4x1xf32> to vector<4x256xf32>
    %104 = arith.addf %101, %103 : vector<4x256xf32>
    %105 = arith.negf %104 : vector<4x256xf32>
    %106 = math.exp %105 : vector<4x256xf32>
    %cst_76 = arith.constant 1.000000e+00 : f32
    %107 = vector.broadcast %cst_76 : f32 to vector<4x256xf32>
    %108 = arith.addf %107, %106 : vector<4x256xf32>
    %109 = arith.divf %107, %108 : vector<4x256xf32>
    %110 = arith.mulf %104, %109 : vector<4x256xf32>
    %c0_77 = arith.constant 0 : index
    %c0_78 = arith.constant 0 : index
    %c0_79 = arith.constant 0 : index
    %111 = vector.load %arg9[%c0_77, %c0_78, %c0_79] : memref<1x4x256xf32, #tpu.memory_space<vmem>>, vector<1x4x256xf32>
    %112 = vector.shape_cast %111 : vector<1x4x256xf32> to vector<4x256xf32>
    %113 = vector.shape_cast %110 : vector<4x256xf32> to vector<1x4x256xf32>
    tpu.vector_store %arg9[%c0_77, %c0_78, %c0_79], %113 {strides = array<i32>} : memref<1x4x256xf32, #tpu.memory_space<vmem>>, vector<1x4x256xf32>,
    return
  }
  func.func @transform_0(%arg0: i32) -> (i32, i32, i32) {
    %c0_i32 = arith.constant 0 : i32
    %c0_i32_0 = arith.constant 0 : i32
    %c0_i32_1 = arith.constant 0 : i32
    return %arg0, %c0_i32, %c0_i32_0 : i32, i32, i32
  }
  func.func @transform_1(%arg0: i32) -> (i32, i32, i32) {
    %c0_i32 = arith.constant 0 : i32
    %c0_i32_0 = arith.constant 0 : i32
    %c0_i32_1 = arith.constant 0 : i32
    return %arg0, %c0_i32, %c0_i32_0 : i32, i32, i32
  }
  func.func @transform_2(%arg0: i32) -> (i32, i32) {
    %c0_i32 = arith.constant 0 : i32
    %c0_i32_0 = arith.constant 0 : i32
    %c0_i32_1 = arith.constant 0 : i32
    return %c0_i32, %c0_i32_0 : i32, i32
  }
  func.func @transform_3(%arg0: i32) -> (i32, i32) {
    %c0_i32 = arith.constant 0 : i32
    %c0_i32_0 = arith.constant 0 : i32
    %c0_i32_1 = arith.constant 0 : i32
    return %c0_i32, %c0_i32_0 : i32, i32
  }
  func.func @transform_4(%arg0: i32) -> (i32, i32) {
    %c0_i32 = arith.constant 0 : i32
    %c0_i32_0 = arith.constant 0 : i32
    %c0_i32_1 = arith.constant 0 : i32
    return %c0_i32, %c0_i32_0 : i32, i32
  }
  func.func @transform_5(%arg0: i32) -> (i32, i32, i32) {
    %c0_i32 = arith.constant 0 : i32
    %c0_i32_0 = arith.constant 0 : i32
    %c0_i32_1 = arith.constant 0 : i32
    %c0_i32_2 = arith.constant 0 : i32
    return %c0_i32, %c0_i32_0, %c0_i32_1 : i32, i32, i32
  }
  func.func @transform_6(%arg0: i32) -> (i32, i32) {
    %c0_i32 = arith.constant 0 : i32
    %c0_i32_0 = arith.constant 0 : i32
    %c0_i32_1 = arith.constant 0 : i32
    return %c0_i32, %c0_i32_0 : i32, i32
  }
  func.func @transform_7(%arg0: i32) -> (i32, i32) {
    %c0_i32 = arith.constant 0 : i32
    %c0_i32_0 = arith.constant 0 : i32
    %c0_i32_1 = arith.constant 0 : i32
    return %c0_i32, %c0_i32_0 : i32, i32
  }
  func.func @transform_8(%arg0: i32) -> (i32, i32, i32) {
    %c0_i32 = arith.constant 0 : i32
    %c0_i32_0 = arith.constant 0 : i32
    %c0_i32_1 = arith.constant 0 : i32
    return %arg0, %c0_i32, %c0_i32_0 : i32, i32, i32
  }
}

</mosaic_0001>

<bundles_post_ra>
// kernel: tile.13
= control target key start
LH: loop header
LB: loop body
LE: loop exit
PB: predicated region body
PF: predicated region fallthrough
CT: control target
= control target key end

     0   :  { %s22_s0 = inlined_call_operand.vmem [shape: f32[4], index: 0, kind: input, shape index: {}]   ;;  %s23_s1 = inlined_call_operand.vmem [shape: f32[4,4], index: 1, kind: output, shape index: {}]  }
   0x1   :  { %v4_v0 = vld [vmem:[%s22_s0] ss:$0 sm:$0xff] }
   0x2   :  { %5 = vst [vmem:[%s23_s1] sm:$0xf] %v4_v0 }

// kernel: mul.12
= control target key start
LH: loop header
LB: loop body
LE: loop exit
PB: predicated region body
PF: predicated region fallthrough
CT: control target
= control target key end

     0   :  { %vm8_vm0 = vcmask 31744   ;;  %s40_s8 = smov 4   ;;  %s41_s9 = smov 8   ;;  %vm14_vm1 = vcmask 130144   ;;  %vm20_vm2 = vcmask 97344   ;;  %vm26_vm3 = vcmask 64544   ;;  %s58_s0 = inlined_call_operand.vmem [shape: f32[4,4], index: 0, kind: input, shape index: {}]   ;;  %s59_s1 = inlined_call_operand.vmem [shape: f32[16], index: 1, kind: output, shape index: {}]  }
   0x1   :  { %v5_v0 = vld [vmem:[%s58_s0] sm:$0xf]  ;;  %s39_s0 = smov 12  }
   0x2   :  { %6 = vst [vmem:[#allocation1] sm:$0xf] %v5_v0 }
   0x9   :  { %v11_v1 = vld [vmem:[#allocation1 + $0x3] sm:$0x1]   ;;  %v23_v2 = vld [vmem:[#allocation1 + $0x1] sm:$0x1]   ;;  %v7_v3 = vld [vmem:[#allocation1] sm:$0x1]  }
   0xa   :  { %12 = vrot.lane.b32.xlu0 %v11_v1, %s39_s0  ;;  %24 = vrot.lane.b32.xlu1 %v23_v2, %s40_s8  ;;  %v17_v4 = vld [vmem:[#allocation1 + $0x2] sm:$0x1]   ;;  %9 = vst.msk [vmem:[#allocation0] sm:$0x1] %vm8_vm0, %v7_v3  }
   0xe   :  { %18 = vrot.lane.b32.xlu0 %v17_v4, %s41_s9 }
  0x7c   :  { %v13_v5 = vpop.permute.xlu0 %12   ;;  %v25_v6 = vpop.permute.xlu1 %24  }
  0x7d   :  { %15 = vst.msk [vmem:[#allocation0] sm:$0x1] %vm14_vm1, %v13_v5  }
  0x80   :  { %v19_v7 = vpop.permute.xlu0 %18  }
  0x81   :  { %21 = vst.msk [vmem:[#allocation0] sm:$0x1] %vm20_vm2, %v19_v7  }
  0x82   :  { %27 = vst.msk [vmem:[#allocation0] sm:$0x1] %vm26_vm3, %v25_v6  }
  0x89   :  { %v32_v8 = vld [vmem:[#allocation0] sm:$0x1] }
  0x8a   :  { %35 = vst [vmem:[%s59_s1] sm:$0x1] %v32_v8 }

// kernel: tile.0
= control target key start
LH: loop header
LB: loop body
LE: loop exit
PB: predicated region body
PF: predicated region fallthrough
CT: control target
= control target key end

     0   :  { %s35_s8 = smov 125   ;;  %vm8_vm0 = vcmask 7168   ;;  %s36_s11 = smov 126   ;;  %s62_s0 = inlined_call_operand.vmem [shape: f32[4,4], index: 0, kind: input, shape index: {}]   ;;  %s63_s1 = inlined_call_operand.vmem [shape: f32[16,1], index: 1, kind: output, shape index: {}]  }
   0x1   :  { %v5_v0 = vld [vmem:[%s62_s0] sm:$0xf]  ;;  %s34_s0 = smov 127  }
   0x2   :  { %6 = vst [vmem:[#allocation0] sm:$0xf] %v5_v0 }
   0x9   :  { %v10_v1 = vld [vmem:[#allocation0] sm:$0xf]  }
   0xa   :  { %v22_v2 = vld [vmem:[#allocation0] sm:$0xf]   ;;  %11 = vrot.lane.b32.xlu0 %v10_v1, %s34_s0 }
   0xb   :  { %23 = vrot.lane.b32.xlu1 %v22_v2, %s35_s8  ;;  %v7_v3 = vld [vmem:[#allocation0] sm:$0xf]  }
   0xc   :  { %v16_v4 = vld [vmem:[#allocation0] sm:$0xf]   ;;  %9 = vst.msk [vmem:[%s63_s1] ss:$4 sm:$0xf] %vm8_vm0, %v7_v3  }
   0xe   :  { %17 = vrot.lane.b32.xlu0 %v16_v4, %s36_s11 }
  0x7c   :  { %v12_v5 = vpop.permute.xlu0 %11  }
  0x7d   :  { %v24_v6 = vpop.permute.xlu1 %23   ;;  %28 = vst.msk [vmem:[%s63_s1 + $0x1] ss:$4 sm:$0xf] %vm8_vm0, %v12_v5  }
  0x7e   :  { %30 = vst.msk [vmem:[%s63_s1 + $0x3] ss:$4 sm:$0xf] %vm8_vm0, %v24_v6  }
  0x80   :  { %v18_v7 = vpop.permute.xlu0 %17  }
  0x81   :  { %29 = vst.msk [vmem:[%s63_s1 + $0x2] ss:$4 sm:$0xf] %vm8_vm0, %v18_v7  }

// kernel: decode_block_forward.1
= control target key start
LH: loop header
LB: loop body
LE: loop exit
PB: predicated region body
PF: predicated region fallthrough
CT: control target
= control target key end

     0   :  { %s1690_s27 = smov 0   ;;  %s1925_s0 = inlined_call_operand.vmem [shape: f32[2,8,256], index: 0, kind: input, shape index: {}]   ;;  %s1926_s1 = inlined_call_operand.vmem [shape: f32[2,4,256], index: 1, kind: input, shape index: {}]   ;;  %s1927_s2 = inlined_call_operand.vmem [shape: f32[16,8], index: 2, kind: input, shape index: {}]   ;;  %s1928_s3 = inlined_call_operand.vmem [shape: f32[16,1], index: 3, kind: input, shape index: {}]   ;;  %s1929_s4 = inlined_call_operand.vmem [shape: f32[4,256], index: 4, kind: input, shape index: {}]   ;;  %s1930_s5 = inlined_call_operand.vmem [shape: f32[9,4,8], index: 5, kind: input, shape index: {}]   ;;  %s1931_s6 = inlined_call_operand.vmem [shape: f32[4,1], index: 6, kind: input, shape index: {}]   ;;  %s1932_s7 = inlined_call_operand.vmem [shape: f32[2,256], index: 7, kind: input, shape index: {}]   ;;  %s1933_s8 = inlined_call_operand.vmem [shape: f32[2,4,256], index: 8, kind: output, shape index: {}]  }
   0x1 LB: > { %s1538_s28 = sadd.s32 4294967295, %s1633_s27   ;;  %p1542_p0 = scmp.ge.s32.totalorder %s1633_s27, 1  ;;  %s1633_s27 = sphi %s1690_s27, %s18_s27  }
   0x2   : > { %p272_p1 = scmp.lt.s32.totalorder %s1633_s27, 3 }
   0x4   : > { %p273_p2 = pnand %p1542_p0, %p272_p1 }
   0x5   : > { %p311_p3 = scmp.lt.s32.totalorder (!%p273_p2), %s1538_s28, 1  ;;  %s1637_s21 = smov (!%p273_p2), 111  }
   0x6   : > { %276 = sbr.rel (%p273_p2) target bundleno = 646 (0x286), region = 52  ;;  %s1638_s24 = smov (!%p273_p2), 113  }
   0x7   : > { %s1639_s25 = smov (!%p273_p2), 127   ;;  %s1640_s26 = smov (!%p273_p2), 1  }
   0x8   : > { %s1641_s29 = smov (!%p273_p2), 15   ;;  %s1642_s30 = smov (!%p273_p2), 17  }
   0x9   : > { %s1643_s9 = smov (!%p273_p2), 16   ;;  %s1644_s23 = smov (!%p273_p2), 112  }
   0xb   : > { %v456_v0 = vlaneseq  ;;  %v1635_v1 = vmov 0.0   ;;  %v1636_v2 = vmov 0   ;;  %v330_v3 = vld [vmem:[%s1928_s3] sm:$0xff]  ;;  %s1935_s28 = smov (!%p311_p3, %s1538_s28), 1  ;;  %v331_v4 = vld [vmem:[%s1928_s3 + $0x8] sm:$0xff]  ;;  %vm342_vm0 = vcmask 64512  }
   0xc   : > { %413 = vmatprep.mubr.f32.mxu0 %v1635_v1  ;;  %1601 = vset.pattern.permute.xlu0 %v1636_v2  ;;  %v545_v6 = vld [vmem:[%s1932_s7] ss:$2 sm:$0x3]  ;;  %v1561_v7 = vld [vmem:[%s1932_s7 + $0x1] ss:$2 sm:$0x3] }
   0xd   : > { %334 = vperm.xlu0 %1601, %v330_v3   ;;  %v457_v5 = vshrl.u32 %v456_v0, 7  ;;  %651 = vmatprep.mubr.f32.mxu1 %v1635_v1  ;;  %s1580_s15 = sshll.u32 %s1935_s28, 4  ;;  %v326_v12 = vld [vmem:[%s1927_s2] sm:$0xff]  ;;  %v327_v16 = vld [vmem:[%s1927_s2 + $0x8] sm:$0xff]  ;;  %s1581_s14 = sshll.u32 %s1935_s28, 3  ;;  %vm537_vm1 = vcmask 1043456  }
   0xe   : > { %s315_s18 = scalar_lea.vmem %s1925_s0, %s1580_s15  ;;  %v1555_v53 = vld [vmem:[%s1929_s4 + $0x1] ss:$4 sm:$0x3]  ;;  %v454_v54 = vld [vmem:[%s1929_s4] ss:$4 sm:$0x3]  ;;  %s320_s22 = scalar_lea.vmem %s1926_s1, %s1581_s14 }
   0xf   : > { %v1715_v8 = vsub.s32 0, %v457_v5  ;;  %v1717_v9 = vsub.s32 1, %v457_v5  ;;  %v329_v10 = vld [vmem:[%s315_s18 + $0x8] sm:$0xff]  ;;  %v328_v11 = vld [vmem:[%s315_s18] sm:$0xff]  ;;  %vm761_vm2 = vcmask 924672   ;;  %vm559_vm3 = vcmask 908288  }
  0x10   : > { %379 = vmatprep.subr.mxu0 %v329_v10  ;;  %v1556_v57 = vld [vmem:[%s1929_s4 + $0x2] ss:$4 sm:$0x3]  ;;  %v1557_v58 = vld [vmem:[%s1929_s4 + $0x3] ss:$4 sm:$0x3] }
  0x11   : > { %339 = vperm.xlu0 %1601, %v331_v4   ;;  %v550_v13 = vrot.slane %v545_v6, %v1715_v8  ;;  %v752_v14 = vrot.slane %v1561_v7, %v1715_v8  ;;  %380 = vmatpush1.msra.mxu0 %v328_v11  ;;  %v554_v15 = vrot.slane %v545_v6, %v1717_v9  ;;  %vm865_vm4 = vcmask 1039360  }
  0x12   : > { %1549 = vmatmul.mubr.msk.f32.vlgmr.msra.gmra.mxu0 %vm342_vm0, %v326_v12  ;;  %v756_v17 = vrot.slane %v1561_v7, %v1717_v9  ;;  %v474_v55 = vrot.slane %v1555_v53, %v1715_v8  ;;  %v459_v60 = vrot.slane %v454_v54, %v1715_v8  ;;  %v478_v61 = vrot.slane %v1555_v53, %v1717_v9 }
  0x13   : > { %555 = vrot.lane.b32.xlu1 %v550_v13, %s1637_s21  ;;  %419 = vmatprep.mubr.f32.mxu0 %v1635_v1  ;;  %v463_v63 = vrot.slane %v454_v54, %v1717_v9  ;;  %v497_v3 = vrot.slane %v1556_v57, %v1715_v8  ;;  %v514_v4 = vrot.slane %v1557_v58, %v1715_v8  ;;  %vm884_vm5 = vcmask 7168  }
  0x14   : > { %vm780_vm6 = vcmask 121856   ;;  %vm667_vm7 = vcmask 138240   ;;  %vm579_vm8 = vcmask 130048   ;;  %vm1261_vm9 = vcmask 916480  }
  0x15   : > { %757 = vrot.lane.b32.xlu0 %v752_v14, %s1638_s24 }
  0x16   : > { %1550 = vmatmul.mubr.msk.f32.gmra.mxu0 %vm342_vm0, %v327_v16  ;;  %v518_v16 = vrot.slane %v1557_v58, %v1717_v9 }
  0x17   : > { %557 = vrot.lane.b32.xlu1 %v554_v15, %s1637_s21  ;;  %852 = vmatprep.mubr.f32.mxu0 %v1635_v1 }
  0x19   : > { %861 = vrot.lane.b32.xlu0 %v550_v13, %s1639_s25 }
  0x1b   : > { %759 = vrot.lane.b32.xlu1 %v756_v17, %s1638_s24 }
  0x1d   : > { %1046 = vrot.lane.b32.xlu0 %v752_v14, %s1640_s26 }
  0x1f   : > { %863 = vrot.lane.b32.xlu1 %v554_v15, %s1639_s25 }
  0x21   : > { %1148 = vrot.lane.b32.xlu0 %v550_v13, %s1641_s29  ;;  %v533_v13 = vld [vmem:[%s320_s22] sm:$0xff] }
  0x23   : > { %1048 = vrot.lane.b32.xlu1 %v756_v17, %s1640_s26 }
  0x25   : > { %1342 = vrot.lane.b32.xlu0 %v752_v14, %s1642_s30 }
  0x27   : > { %1150 = vrot.lane.b32.xlu1 %v554_v15, %s1641_s29  ;;  %v501_v15 = vrot.slane %v1556_v57, %v1717_v9 }
  0x29   : > { %573 = vrot.lane.b32.xlu0 %v1635_v1, %s1643_s9 }
  0x2b   : > { %1344 = vrot.lane.b32.xlu1 %v756_v17, %s1642_s30 }
  0x85   : > { %v1750_v18 = vpop.permute.xlu1 %555 }
  0x86   : > { %v564_v19 = vmul.f32 0.0, %v1750_v18 }
  0x88   : > { %v335_v20 = vpop.permute.xlu0 %334  ;;  %661 = vrot.lane.b32.xlu1 %v564_v19, %s1642_s30 }
  0x89   : > { %v1754_v21 = vpop.permute.xlu1 %557 }
  0x8c   : > { %v340_v22 = vpop.permute.xlu0 %339 }
  0x8d   : > { %v1756_v23 = vpop.permute.xlu1 %759 }
  0x90   : > { %v1758_v24 = vpop.permute.xlu0 %757 }
  0x91   : > { %v766_v25 = vmul.f32 0.0, %v1758_v24  ;;  %v1761_v26 = vpop.permute.xlu1 %863  ;;  %v762_v9 = vsel %vm761_vm2, %v1758_v24, %v1756_v23 }
  0x93   : > { %774 = vrot.lane.b32.xlu0 %v766_v25, %s1641_s29 }
  0x94   : > { %v1764_v27 = vpop.permute.xlu0 %861 }
  0x95   : > { %v870_v28 = vmul.f32 0.0, %v1764_v27  ;;  %v1767_v29 = vpop.permute.xlu1 %1048  ;;  %v866_v24 = vsel %vm865_vm4, %v1764_v27, %v1761_v26 }
  0x96   : > { %v1056_v30 = vmul.f32 0.0, %v1767_v29 }
  0x97   : > { %878 = vrot.lane.b32.xlu1 %v870_v28, %s1640_s26  ;;  %v535_v28 = vcombine.low %v533_v13, %v533_v13 }
  0x99   : > { %v1771_v31 = vpop.permute.xlu1 %1150 }
  0x9a   : > { %v1158_v32 = vmul.f32 0.0, %v1771_v31 }
  0x9b   : > { %1066 = vrot.lane.b32.xlu1 %v1056_v30, %s1639_s25 }
  0x9c   : > { %1168 = vrot.lane.b32.xlu0 %v1158_v32, %s1638_s24 }
  0xd2   : > { %v415_v33 = vpop.f32.mrf.mxu0 }
  0xd3   : > { %v416_v34 = vadd.f32 %v415_v33, %v335_v20 }
  0xd4   : > { %v417_v35 = vpop.f32.mrf.mxu0 }
  0xd5   : > { %v1551_v36 = vmul.f32 -1.442695, %v416_v34  ;;  %v418_v37 = vadd.f32 %v417_v35, %v335_v20 }
  0xd6   : > { %v421_v38 = vpop.f32.mrf.mxu0 }
  0xd7   : > { %1603 = vpow2.f32 %v1551_v36  ;;  %v1552_v39 = vmul.f32 -1.442695, %v418_v37  ;;  %v422_v40 = vadd.f32 %v421_v38, %v340_v22 }
  0xd8   : > { %v423_v41 = vpop.f32.mrf.mxu0 }
  0xd9   : > { %1605 = vpow2.f32 %v1552_v39  ;;  %v1553_v42 = vmul.f32 -1.442695, %v422_v40  ;;  %v424_v43 = vadd.f32 %v423_v41, %v340_v22 }
  0xdb   : > { %1607 = vpow2.f32 %v1553_v42  ;;  %v1554_v44 = vmul.f32 -1.442695, %v424_v43  ;;  %v560_v42 = vsel %vm559_vm3, %v1750_v18, %v1754_v21 }
  0xdd   : > { %1609 = vpow2.f32 %v1554_v44  ;;  %v1047_v44 = vpop.permute.xlu0 %1046 }
  0xe1   : > { %v1149_v18 = vpop.permute.xlu0 %1148 }
  0xe4   : > { %v1604_v45 = vpop.eup %1603 }
  0xe5   : > { %v438_v46 = vadd.f32 1.0, %v1604_v45 }
  0xe6   : > { %v1606_v47 = vpop.eup %1605 }
  0xe7   : > { %1611 = vrcp.f32 %v438_v46  ;;  %v439_v48 = vadd.f32 1.0, %v1606_v47 }
  0xe8   : > { %v1608_v49 = vpop.eup %1607 }
  0xe9   : > { %1613 = vrcp.f32 %v439_v48  ;;  %v440_v50 = vadd.f32 1.0, %v1608_v49 }
  0xea   : > { %v1610_v51 = vpop.eup %1609 }
  0xeb   : > { %1615 = vrcp.f32 %v440_v50  ;;  %v441_v52 = vadd.f32 1.0, %v1610_v51  ;;  %v1050_v50 = vsel %vm884_vm5, %v1047_v44, %v1767_v29  ;;  %v1343_v51 = vpop.permute.xlu0 %1342 }
  0xed   : > { %1617 = vrcp.f32 %v441_v52  ;;  %v1345_v52 = vpop.permute.xlu1 %1344 }
  0xee   : > { %v1346_v53 = vsel %vm667_vm7, %v1343_v51, %v1345_v52  ;;  %v1352_v54 = vmul.f32 0.0, %v1345_v52 }
  0xf4   : > { %v1612_v56 = vpop.eup %1611 }
  0xf5   : > { %v450_v59 = vmul.f32 %v1612_v56, %v416_v34  ;;  %v574_v56 = vpop.permute.xlu0 %573 }
  0xf6   : > { %v1614_v62 = vpop.eup %1613 }
  0xf7   : > { %v481_v0 = vmul.f32 %v474_v55, %v450_v59  ;;  %v451_v2 = vmul.f32 %v1614_v62, %v418_v37  ;;  %v466_v6 = vmul.f32 %v459_v60, %v450_v59 }
  0xf8   : > { %v1616_v5 = vpop.eup %1615 }
  0xf9   : > { %v485_v7 = vrot.slane %v481_v0, 4  ;;  %v482_v10 = vmul.f32 %v478_v61, %v451_v2  ;;  %v452_v11 = vmul.f32 %v1616_v5, %v422_v40  ;;  %v467_v14 = vmul.f32 %v463_v63, %v451_v2 }
  0xfa   : > { %v1618_v12 = vpop.eup %1617  ;;  %v662_v57 = vpop.permute.xlu1 %661 }
  0xfb   : > { %v489_v17 = vadd.f32 %v485_v7, %v466_v6  ;;  %v486_v19 = vrot.slane %v482_v10, 4  ;;  %v504_v20 = vmul.f32 %v497_v3, %v452_v11  ;;  %v521_v22 = vmul.f32 %v514_v4, %v452_v11  ;;  %v1558_v3 = vld [vmem:[%s1930_s5 + $0x4] sm:$0xf] }
  0xfc   : > { %v453_v25 = vmul.f32 %v1618_v12, %v424_v43 }
  0xfd   : > { %v490_v30 = vadd.f32 %v486_v19, %v467_v14  ;;  %v506_v8 = vadd.f32 %v504_v20, %v489_v17  ;;  %v525_v32 = vrot.slane %v521_v22, 4  ;;  %v567_v14 = vld [vmem:[%s1930_s5] sm:$0xf]  ;;  %v1562_v20 = vld [vmem:[%s1930_s5 + $0x8] sm:$0xf] }
  0xfe   : > { %v505_v33 = vmul.f32 %v501_v15, %v453_v25  ;;  %v522_v34 = vmul.f32 %v518_v16, %v453_v25 }
  0xff   : > { %v529_v35 = vadd.f32 %v525_v32, %v506_v8 }
 0x100   : > { %v507_v36 = vadd.f32 %v505_v33, %v490_v30  ;;  %v526_v37 = vrot.slane %v522_v34, 4  ;;  %v1566_v33 = vld [vmem:[%s1930_s5 + $0x10] sm:$0xf] }
 0x101   : > { %v1802_v38 = vsel %vm537_vm1, %v529_v35, %v535_v28  ;;  %v1564_v28 = vld [vmem:[%s1930_s5 + $0xc] sm:$0xf] }
 0x102   : > { %v530_v39 = vadd.f32 %v526_v37, %v507_v36  ;;  %575 = vrot.lane.b32.xlu0 %v1802_v38, %s1643_s9  ;;  %v767_v41 = vmul.f32 %v762_v9, %v1802_v38  ;;  %v565_v43 = vmul.f32 %v560_v42, %v1802_v38  ;;  %v1054_v45 = vmul.f32 %v1047_v44, %v1802_v38  ;;  %v1568_v36 = vld [vmem:[%s1930_s5 + $0x14] sm:$0xf] }
 0x103   : > { %v871_v46 = vmul.f32 %v866_v24, %v1802_v38  ;;  %v1156_v47 = vmul.f32 %v1149_v18, %v1802_v38  ;;  %v1350_v55 = vmul.f32 %v1343_v51, %v1802_v38 }
 0x104   : > { %v1809_v40 = vsel %vm537_vm1, %v530_v39, %v533_v13 }
 0x105   : > { %577 = vrot.lane.b32.xlu1 %v1809_v40, %s1643_s9  ;;  %v566_v48 = vmul.f32 %v1754_v21, %v1809_v40  ;;  %v768_v27 = vmul.f32 %v1756_v23, %v1809_v40  ;;  %v872_v49 = vmul.f32 %v1761_v26, %v1809_v40  ;;  %v1055_v21 = vmul.f32 %v1050_v50, %v1809_v40  ;;  %v775_v58 = vpop.permute.xlu0 %774 }
 0x106   : > { %776 = vrot.lane.b32.xlu0 %v767_v41, %s1641_s29  ;;  %v1152_v23 = vsel %vm780_vm6, %v1149_v18, %v1771_v31  ;;  %v1351_v29 = vmul.f32 %v1346_v53, %v1809_v40  ;;  %v1444_v31 = vld [vmem:[%s1931_s6] sm:$0xf]  ;;  %v1570_v41 = vld [vmem:[%s1930_s5 + $0x18] sm:$0xf] }
 0x107   : > { %v1157_v26 = vmul.f32 %v1152_v23, %v1809_v40  ;;  %v1574_v18 = vld [vmem:[%s1930_s5 + $0x20] sm:$0xf] }
 0x109   : > { %663 = vrot.lane.b32.xlu1 %v565_v43, %s1642_s30  ;;  %v879_v59 = vpop.permute.xlu1 %878  ;;  %v1572_v43 = vld [vmem:[%s1930_s5 + $0x1c] sm:$0xf] }
 0x10a   : > { %1062 = vrot.lane.b32.xlu0 %v1054_v45, %s1639_s25 }
 0x10d   : > { %880 = vrot.lane.b32.xlu1 %v871_v46, %s1640_s26  ;;  %v1067_v61 = vpop.permute.xlu1 %1066 }
 0x10e   : > { %1257 = vrot.lane.b32.xlu0 %v1809_v40, %s1644_s23  ;;  %v1169_v60 = vpop.permute.xlu0 %1168 }
 0x111   : > { %1164 = vrot.lane.b32.xlu1 %v1156_v47, %s1638_s24 }
 0x112   : > { %665 = vrot.lane.b32.xlu0 %v566_v48, %s1642_s30 }
 0x115   : > { %778 = vrot.lane.b32.xlu1 %v768_v27, %s1641_s29 }
 0x116   : > { %882 = vrot.lane.b32.xlu0 %v872_v49, %s1640_s26 }
 0x119   : > { %1259 = vrot.lane.b32.xlu1 %v1635_v1, %s1644_s23 }
 0x11a   : > { %1064 = vrot.lane.b32.xlu0 %v1055_v21, %s1639_s25  ;;  %s325_s25 = scalar_lea.vmem %s1933_s8, %s1581_s14 }
 0x11d   : > { %1166 = vrot.lane.b32.xlu1 %v1157_v26, %s1638_s24 }
 0x11e   : > { %1255 = vrot.lane.b32.xlu0 %v1802_v38, %s1644_s23 }
 0x121   : > { %1360 = vrot.lane.b32.xlu1 %v1351_v29, %s1637_s21 }
 0x122   : > { %1362 = vrot.lane.b32.xlu0 %v1352_v54, %s1637_s21 }
 0x125   : > { %1358 = vrot.lane.b32.xlu1 %v1350_v55, %s1637_s21 }
 0x126   : > { %1447 = vperm.xlu0 %1601, %v1444_v31  }
 0x174   : > { %v576_v62 = vpop.permute.xlu0 %575 }
 0x175   : > { %v580_v4 = vsel %vm579_vm8, %v574_v56, %v576_v62 }
 0x177   : > { %v578_v63 = vpop.permute.xlu1 %577 }
 0x178   : > { %v581_v0 = vsel %vm579_vm8, %v576_v62, %v578_v63  ;;  %v777_v2 = vpop.permute.xlu0 %776 }
 0x179   : > { %617 = vmatprep.subr.mxu1 %v581_v0  ;;  %v781_v22 = vsel %vm780_vm6, %v775_v58, %v777_v2 }
 0x17a   : > { %618 = vmatpush1.msra.mxu1 %v580_v4 }
 0x17b   : > { %v664_v5 = vpop.permute.xlu1 %663  ;;  %1559 = vmatmul.mubr.msk.f32.vlgmr.msra.gmra.mxu1 %vm342_vm0, %v1558_v3 }
 0x17c   : > { %v1063_v6 = vpop.permute.xlu0 %1062  ;;  %739 = vmatprep.mubr.f32.mxu1 %v1635_v1  ;;  %v668_v15 = vsel %vm667_vm7, %v662_v57, %v664_v5 }
 0x17f   : > { %v881_v7 = vpop.permute.xlu1 %880 }
 0x180   : > { %v1258_v10 = vpop.permute.xlu0 %1257  ;;  %v885_v30 = vsel %vm884_vm5, %v879_v59, %v881_v7 }
 0x183   : > { %v1165_v11 = vpop.permute.xlu1 %1164 }
 0x184   : > { %v666_v12 = vpop.permute.xlu0 %665 }
 0x185   : > { %v669_v13 = vsel %vm667_vm7, %v664_v5, %v666_v12 }
 0x186   : > { %705 = vmatprep.subr.mxu1 %v669_v13 }
 0x187   : > { %v779_v16 = vpop.permute.xlu1 %778  ;;  %706 = vmatpush1.msra.mxu1 %v668_v15 }
 0x188   : > { %v883_v17 = vpop.permute.xlu0 %882  ;;  %v782_v19 = vsel %vm780_vm6, %v777_v2, %v779_v16  ;;  %1560 = vmatmul.mubr.msk.f32.vlgmr.msra.gmra.mxu1 %vm342_vm0, %v567_v14 }
 0x189   : > { %818 = vmatprep.subr.mxu0 %v782_v19  ;;  %v886_v25 = vsel %vm884_vm5, %v881_v7, %v883_v17  ;;  %956 = vmatprep.mubr.f32.mxu1 %v1635_v1 }
 0x18a   : > { %819 = vmatpush1.msra.mxu0 %v781_v22  ;;  %922 = vmatprep.subr.mxu1 %v886_v25 }
 0x18b   : > { %1000 = vmatprep.subr.mxu0 %v1809_v40  ;;  %v1260_v8 = vpop.permute.xlu1 %1259  ;;  %1563 = vmatmul.mubr.msk.f32.vlgmr.msra.gmra.mxu0 %vm342_vm0, %v1562_v20 }
 0x18c   : > { %923 = vmatpush1.msra.mxu1 %v885_v30  ;;  %1001 = vmatpush1.msra.mxu0 %v1802_v38  ;;  %v1065_v32 = vpop.permute.xlu0 %1064  ;;  %v1263_v38 = vsel %vm1261_vm9, %v1258_v10, %v1260_v8 }
 0x18d   : > { %v1068_v34 = vsel %vm865_vm4, %v1063_v6, %v1065_v32  ;;  %1565 = vmatmul.mubr.msk.f32.vlgmr.msra.gmra.mxu1 %vm342_vm0, %v1564_v28  ;;  %1034 = vmatprep.mubr.f32.mxu0 %v1635_v1  ;;  %v1069_v35 = vsel %vm865_vm4, %v1065_v32, %v1067_v61 }
 0x18e   : > { %1105 = vmatprep.subr.mxu1 %v1069_v35  ;;  %1139 = vmatprep.mubr.f32.mxu1 %v1635_v1 }
 0x18f   : > { %v1167_v37 = vpop.permute.xlu1 %1166  ;;  %1567 = vmatmul.mubr.msk.f32.vlgmr.msra.gmra.mxu0 %vm342_vm0, %v1566_v33  ;;  %1106 = vmatpush1.msra.mxu1 %v1068_v34 }
 0x190   : > { %v1170_v39 = vsel %vm761_vm2, %v1165_v11, %v1167_v37  ;;  %v1256_v9 = vpop.permute.xlu0 %1255  ;;  %v1171_v40 = vsel %vm761_vm2, %v1167_v37, %v1169_v60  ;;  %1299 = vmatprep.subr.mxu1 %v1263_v38  ;;  %1241 = vmatprep.mubr.f32.mxu0 %v1635_v1 }
 0x191   : > { %v1262_v42 = vsel %vm1261_vm9, %v1256_v9, %v1258_v10  ;;  %1207 = vmatprep.subr.mxu0 %v1171_v40  ;;  %1569 = vmatmul.mubr.msk.f32.vlgmr.msra.gmra.mxu1 %vm342_vm0, %v1568_v36 }
 0x192   : > { %1208 = vmatpush1.msra.mxu0 %v1170_v39  ;;  %1300 = vmatpush1.msra.mxu1 %v1262_v42 }
 0x193   : > { %v1361_v44 = vpop.permute.xlu1 %1360  ;;  %1571 = vmatmul.mubr.msk.f32.vlgmr.msra.gmra.mxu0 %vm342_vm0, %v1570_v41  ;;  %1333 = vmatprep.mubr.f32.mxu1 %v1635_v1 }
 0x194   : > { %v1363_v45 = vpop.permute.xlu0 %1362  ;;  %1435 = vmatprep.mubr.f32.mxu0 %v1635_v1 }
 0x195   : > { %1573 = vmatmul.mubr.msk.f32.vlgmr.msra.gmra.mxu1 %vm342_vm0, %v1572_v43  ;;  %v1365_v24 = vsel %vm559_vm3, %v1361_v44, %v1363_v45 }
 0x196   : > { %1401 = vmatprep.subr.mxu0 %v1365_v24 }
 0x197   : > { %v1359_v46 = vpop.permute.xlu1 %1358 }
 0x198   : > { %v1364_v47 = vsel %vm559_vm3, %v1359_v46, %v1361_v44 }
 0x199   : > { %1402 = vmatpush1.msra.mxu0 %v1364_v47 }
 0x19a   : > { %1575 = vmatmul.mubr.msk.f32.vlgmr.msra.gmra.mxu0 %vm342_vm0, %v1574_v18 }
 0x1a1   : > { %v1448_v12 = vpop.permute.xlu0 %1447 }
 0x23b   : > { %v653_v48 = vpop.f32.mrf.mxu1 }
 0x23d   : > { %v655_v27 = vpop.f32.mrf.mxu1 }
 0x248   : > { %v741_v49 = vpop.f32.mrf.mxu1 }
 0x249   : > { %v742_v50 = vadd.f32 %v741_v49, %v653_v48 }
 0x24a   : > { %v743_v1 = vpop.f32.mrf.mxu1 }
 0x24b   : > { %v744_v21 = vadd.f32 %v743_v1, %v655_v27  ;;  %v854_v51 = vpop.f32.mrf.mxu0 }
 0x24c   : > { %v859_v52 = vadd.f32 %v854_v51, %v742_v50 }
 0x24d   : > { %v856_v23 = vpop.f32.mrf.mxu0  ;;  %v958_v26 = vpop.f32.mrf.mxu1 }
 0x24e   : > { %v860_v53 = vadd.f32 %v856_v23, %v744_v21  ;;  %v963_v29 = vadd.f32 %v958_v26, %v859_v52 }
 0x24f   : > { %v960_v54 = vpop.f32.mrf.mxu1  ;;  %v1036_v55 = vpop.f32.mrf.mxu0 }
 0x250   : > { %v964_v31 = vadd.f32 %v960_v54, %v860_v53  ;;  %v1041_v56 = vadd.f32 %v1036_v55, %v963_v29 }
 0x251   : > { %v1038_v57 = vpop.f32.mrf.mxu0  ;;  %v1141_v58 = vpop.f32.mrf.mxu1 }
 0x252   : > { %v1042_v59 = vadd.f32 %v1038_v57, %v964_v31  ;;  %v1146_v60 = vadd.f32 %v1141_v58, %v1041_v56 }
 0x253   : > { %v1143_v61 = vpop.f32.mrf.mxu1  ;;  %v1243_v62 = vpop.f32.mrf.mxu0 }
 0x254   : > { %v1147_v63 = vadd.f32 %v1143_v61, %v1042_v59  ;;  %v1248_v0 = vadd.f32 %v1243_v62, %v1146_v60 }
 0x255   : > { %v1245_v2 = vpop.f32.mrf.mxu0  ;;  %v1335_v3 = vpop.f32.mrf.mxu1 }
 0x256   : > { %v1249_v4 = vadd.f32 %v1245_v2, %v1147_v63  ;;  %v1340_v6 = vadd.f32 %v1335_v3, %v1248_v0 }
 0x257   : > { %v1337_v5 = vpop.f32.mrf.mxu1 }
 0x258   : > { %v1341_v10 = vadd.f32 %v1337_v5, %v1249_v4 }
 0x25a   : > { %v1437_v7 = vpop.f32.mrf.mxu0 }
 0x25b   : > { %v1442_v11 = vadd.f32 %v1437_v7, %v1340_v6 }
 0x25c   : > { %v1439_v13 = vpop.f32.mrf.mxu0 }
 0x25d   : > { %v1450_v14 = vadd.f32 %v1448_v12, %v1442_v11  ;;  %v1443_v15 = vadd.f32 %v1439_v13, %v1341_v10 }
 0x25f   : > { %v1576_v16 = vmul.f32 -1.442695, %v1450_v14  ;;  %v1451_v17 = vadd.f32 %v1448_v12, %v1443_v15 }
 0x261   : > { %1619 = vpow2.f32 %v1576_v16  ;;  %v1577_v19 = vmul.f32 -1.442695, %v1451_v17 }
 0x263   : > { %1621 = vpow2.f32 %v1577_v19 }
 0x26e   : > { %v1620_v20 = vpop.eup %1619 }
 0x26f   : > { %v1458_v22 = vadd.f32 1.0, %v1620_v20 }
 0x270   : > { %v1622_v25 = vpop.eup %1621 }
 0x271   : > { %1623 = vrcp.f32 %v1458_v22  ;;  %v1459_v28 = vadd.f32 1.0, %v1622_v25 }
 0x273   : > { %1625 = vrcp.f32 %v1459_v28 }
 0x27e   : > { %v1624_v30 = vpop.eup %1623 }
 0x27f   : > { %v1464_v32 = vmul.f32 %v1624_v30, %v1450_v14 }
 0x280   : > { %v1626_v8 = vpop.eup %1625 }
 0x281   : > { %v1465_v33 = vmul.f32 %v1626_v8, %v1451_v17 }
 0x283   : > { %v1468_v34 = vcombine.low %v1464_v32, %v1465_v33 }
 0x285   : > { %1470 = vst [vmem:[%s325_s25] sm:$0xff] %v1468_v34 }
 0x286 PF: > { %s18_s27 = sadd.s32 1, %s1633_s27  }
 0x287   : > { %p15_p4 = scmp.ge.s32.totalorder %s18_s27, 4  }
 0x289   :  { %17 = sbr.rel (!%p15_p4) target bundleno = 1 (0x1), region = 97 }

</bundles_post_ra>
